<compile_context>
chip_gen: v6e
topology: v6e:2x2x1
jax: 0.10.0
libtpu: 0.0.40
codegen_flags: <defaults>
</compile_context>

<pallas_src>
import jax
import jax.numpy as jnp
from jax.experimental import pallas as pl
from jax.experimental.pallas import tpu as pltpu


def _round_up(x, m):
    return ((x + m - 1) // m) * m


def w2v_kernel(idx_ref, emb_hbm, w_ref, b_ref, out_ref,
               rows_ref, embeds_ref, sem_ref):
    """One vocab tile of the forward pass.

    idx_ref   : SMEM (S,) int32              (scalar prefetch)
    emb_hbm   : HBM  (V, D_pad) f32          (memory_space=pl.ANY, gathered via DMA)
    w_ref     : VMEM (D_pad, TV) bf16        (transposed linear weight tile)
    b_ref     : VMEM (1, TV) f32             (bias tile)
    out_ref   : VMEM (1, TV) f32             (output tile)
    rows_ref  : VMEM (S, D_pad) f32 scratch  (gathered embedding rows)
    embeds_ref: VMEM (1, D_pad) f32 scratch  (context sum, persists across vocab tiles)
    sem_ref   : DMA semaphores (S,)
    """

    @pl.when(pl.program_id(0) == 0)
    def _():
        num_ctx = rows_ref.shape[0]
        # Data-dependent gather: DMA exactly the S embedding rows we need.
        copies = [
            pltpu.make_async_copy(emb_hbm.at[idx_ref[s]], rows_ref.at[s], sem_ref.at[s])
            for s in range(num_ctx)
        ]
        for cp in copies:
            cp.start()
        for cp in copies:
            cp.wait()
        # embeds = sum over context words (f32 accumulation), shape (1, D_pad)
        embeds_ref[...] = jnp.sum(rows_ref[...], axis=0, keepdims=True)

    # Linear tile: (1, D_pad) @ (D_pad, TV) on the MXU with f32 accumulation.
    out = jnp.dot(
        embeds_ref[...].astype(w_ref.dtype),
        w_ref[...],
        preferred_element_type=jnp.float32,
    )  # (1, TV)
    out_ref[...] = out + b_ref[...]


@jax.jit
def word2vec_forward(indices, emb_weight, lin_weight, lin_bias):
    """indices: (S,) int; emb_weight: (V, D); lin_weight: (V, D); lin_bias: (V,)."""
    S = int(indices.shape[0])
    V, D = emb_weight.shape
    d_pad = _round_up(D, 8)                       # sublane-aligned contraction dim

    # Vocab tile: 128-multiple, capped so a double-buffered bf16 weight tile stays tiny.
    tv_cap = max(128, min(8192, ((1 << 22) // (d_pad * 2)) // 128 * 128))
    tv = min(tv_cap, _round_up(V, 128))
    v_pad = _round_up(V, tv)
    n_tiles = v_pad // tv

    # Pad / transpose to lane- and sublane-dense shapes (padded slots are zero => inert).
    emb_p = jnp.pad(emb_weight.astype(jnp.float32), ((0, 0), (0, d_pad - D)))
    w_t = jnp.pad(lin_weight.astype(jnp.float32).T,
                  ((0, d_pad - D), (0, v_pad - V))).astype(jnp.bfloat16)
    b_p = jnp.pad(lin_bias.astype(jnp.float32), (0, v_pad - V)).reshape(1, v_pad)
    idx = indices.astype(jnp.int32)

    grid_spec = pltpu.PrefetchScalarGridSpec(
        num_scalar_prefetch=1,
        grid=(n_tiles,),
        in_specs=[
            pl.BlockSpec(memory_space=pl.ANY),                   # embedding table (HBM)
            pl.BlockSpec((d_pad, tv), lambda j, idx: (0, j)),    # transposed weight tile
            pl.BlockSpec((1, tv), lambda j, idx: (0, j)),        # bias tile
        ],
        out_specs=pl.BlockSpec((1, tv), lambda j, idx: (0, j)),
        scratch_shapes=[
            pltpu.VMEM((S, d_pad), jnp.float32),                 # gathered embedding rows
            pltpu.VMEM((1, d_pad), jnp.float32),                 # persistent context sum
            pltpu.SemaphoreType.DMA((S,)),
        ],
    )

    cost = pl.CostEstimate(
        flops=2 * d_pad * v_pad + S * d_pad,
        transcendentals=0,
        bytes_accessed=v_pad * d_pad * 2          # bf16 weight stream
        + S * d_pad * 4                           # one-time row gather
        + 2 * v_pad * 4                           # bias + output
        + S * 4,                                  # indices
    )

    out = pl.pallas_call(
        w2v_kernel,
        out_shape=jax.ShapeDtypeStruct((1, v_pad), jnp.float32),
        grid_spec=grid_spec,
        compiler_params=pltpu.CompilerParams(
            # sequential vocab tiles: lets the step-0 gather / embeds scratch persist
            dimension_semantics=("arbitrary",),
        ),
        cost_estimate=cost,
    )(idx, emb_p, w_t, b_p)

    return out[0, :V]


if __name__ == "__main__":
    # Small synthetic sizes consistent with the module (embedding_dim = 3 in the spec).
    vocab_size = 50
    embedding_dim = 3
    context_len = 8  # number of context-word indices fed to forward()

    key = jax.random.PRNGKey(0)
    k_idx, k_emb, k_w, k_b = jax.random.split(key, 4)

    indices = jax.random.randint(k_idx, (context_len,), 0, vocab_size, dtype=jnp.int32)
    emb_weight = jax.random.normal(k_emb, (vocab_size, embedding_dim), jnp.float32)
    lin_weight = jax.random.normal(k_w, (vocab_size, embedding_dim), jnp.float32) * 0.1
    lin_bias = jax.random.normal(k_b, (vocab_size,), jnp.float32) * 0.01

    out = jax.block_until_ready(
        word2vec_forward(indices, emb_weight, lin_weight, lin_bias)
    )

    # Pure-JAX reference (mirrors the PyTorch forward; operands rounded to bf16 to match
    # the kernel's bf16 matmul with f32 accumulation).
    embeds_ref = emb_weight[indices].sum(axis=0)
    e_b = embeds_ref.astype(jnp.bfloat16).astype(jnp.float32)
    w_b = lin_weight.astype(jnp.bfloat16).astype(jnp.float32)
    out_ref = e_b @ w_b.T + lin_bias

    assert out.shape == (vocab_size,)
    assert jnp.allclose(out, out_ref, atol=1e-2, rtol=1e-2), (out, out_ref)

    print("KERNEL_OK")
</pallas_src>

<mosaic_0001>
module attributes {stable_mosaic.version = 11 : i64} {
  func.func @w2v_kernel(%arg0: i32, %arg1: memref<8xi32, #tpu.memory_space<smem>>, %arg2: memref<50x8xf32, #tpu.memory_space<any>>, %arg3: memref<8x128xbf16, #tpu.memory_space<vmem>>, %arg4: memref<1x128xf32, #tpu.memory_space<vmem>>, %arg5: memref<1x128xf32, #tpu.memory_space<vmem>>, %arg6: memref<8x8xf32, #tpu.memory_space<vmem>>, %arg7: memref<1x8xf32, #tpu.memory_space<vmem>>, %arg8: memref<8x!tpu.dma_semaphore, #tpu.memory_space<semaphore_mem>>) attributes {dimension_semantics = [#tpu.dimension_semantics<arbitrary>], iteration_bounds = array<i64: 1>, scalar_prefetch = 1 : i64, scratch_operands = 3 : i64, tpu.core_type = #tpu.core_type<tc>, window_params = [{}, {transform_indices = @transform_1, window_bounds = array<i64: 8, 128>}, {transform_indices = @transform_2, window_bounds = array<i64: 1, 128>}, {transform_indices = @transform_3, window_bounds = array<i64: 1, 128>}]} {
    %c0_i32 = arith.constant 0 : i32
    %0 = arith.cmpi eq, %arg0, %c0_i32 : i32
    %1 = arith.extui %0 : i1 to i32
    %c0_i32_0 = arith.constant 0 : i32
    %2 = arith.cmpi ne, %1, %c0_i32_0 : i32
    scf.if %2 {
      %c0_8 = arith.constant 0 : index
      %10 = memref.load %arg1[%c0_8] : memref<8xi32, #tpu.memory_space<smem>>
      %c1 = arith.constant 1 : index
      %11 = memref.load %arg1[%c1] : memref<8xi32, #tpu.memory_space<smem>>
      %c2 = arith.constant 2 : index
      %12 = memref.load %arg1[%c2] : memref<8xi32, #tpu.memory_space<smem>>
      %c3 = arith.constant 3 : index
      %13 = memref.load %arg1[%c3] : memref<8xi32, #tpu.memory_space<smem>>
      %c4 = arith.constant 4 : index
      %14 = memref.load %arg1[%c4] : memref<8xi32, #tpu.memory_space<smem>>
      %c5 = arith.constant 5 : index
      %15 = memref.load %arg1[%c5] : memref<8xi32, #tpu.memory_space<smem>>
      %c6 = arith.constant 6 : index
      %16 = memref.load %arg1[%c6] : memref<8xi32, #tpu.memory_space<smem>>
      %c7 = arith.constant 7 : index
      %17 = memref.load %arg1[%c7] : memref<8xi32, #tpu.memory_space<smem>>
      %c0_i32_9 = arith.constant 0 : i32
      %c0_i32_10 = arith.constant 0 : i32
      %c0_i32_11 = arith.constant 0 : i32
      %18 = tpu.memref_slice %arg2[%10, %c0_i32_11] : memref<50x8xf32, #tpu.memory_space<any>> -> memref<1x8xf32, #tpu.memory_space<any>>
      %19 = tpu.memref_squeeze %18 : memref<1x8xf32, #tpu.memory_space<any>> -> memref<8xf32, #tpu.memory_space<any>>
      %c0_i32_12 = arith.constant 0 : i32
      %20 = tpu.memref_slice %arg6[%c0_i32_9, %c0_i32_12] : memref<8x8xf32, #tpu.memory_space<vmem>> -> memref<1x8xf32, #tpu.memory_space<vmem>>
      %21 = tpu.memref_squeeze %20 : memref<1x8xf32, #tpu.memory_space<vmem>> -> memref<8xf32, #tpu.memory_space<vmem>>
      %22 = tpu.memref_slice %arg8[%c0_i32_10] : memref<8x!tpu.dma_semaphore, #tpu.memory_space<semaphore_mem>> -> memref<1x!tpu.dma_semaphore, #tpu.memory_space<semaphore_mem>>
      %23 = tpu.memref_squeeze %22 : memref<1x!tpu.dma_semaphore, #tpu.memory_space<semaphore_mem>> -> memref<!tpu.dma_semaphore, #tpu.memory_space<semaphore_mem>>
      tpu.enqueue_dma source(%19 : memref<8xf32, #tpu.memory_space<any>>) target(%21 : memref<8xf32, #tpu.memory_space<vmem>>) target_semaphore(%23 : memref<!tpu.dma_semaphore, #tpu.memory_space<semaphore_mem>>)
      %c1_i32 = arith.constant 1 : i32
      %c1_i32_13 = arith.constant 1 : i32
      %c0_i32_14 = arith.constant 0 : i32
      %24 = tpu.memref_slice %arg2[%11, %c0_i32_14] : memref<50x8xf32, #tpu.memory_space<any>> -> memref<1x8xf32, #tpu.memory_space<any>>
      %25 = tpu.memref_squeeze %24 : memref<1x8xf32, #tpu.memory_space<any>> -> memref<8xf32, #tpu.memory_space<any>>
      %c0_i32_15 = arith.constant 0 : i32
      %26 = tpu.memref_slice %arg6[%c1_i32, %c0_i32_15] : memref<8x8xf32, #tpu.memory_space<vmem>> -> memref<1x8xf32, #tpu.memory_space<vmem>>
      %27 = tpu.memref_squeeze %26 : memref<1x8xf32, #tpu.memory_space<vmem>> -> memref<8xf32, #tpu.memory_space<vmem>>
      %28 = tpu.memref_slice %arg8[%c1_i32_13] : memref<8x!tpu.dma_semaphore, #tpu.memory_space<semaphore_mem>> -> memref<1x!tpu.dma_semaphore, #tpu.memory_space<semaphore_mem>>
      %29 = tpu.memref_squeeze %28 : memref<1x!tpu.dma_semaphore, #tpu.memory_space<semaphore_mem>> -> memref<!tpu.dma_semaphore, #tpu.memory_space<semaphore_mem>>
      tpu.enqueue_dma source(%25 : memref<8xf32, #tpu.memory_space<any>>) target(%27 : memref<8xf32, #tpu.memory_space<vmem>>) target_semaphore(%29 : memref<!tpu.dma_semaphore, #tpu.memory_space<semaphore_mem>>)
      %c2_i32 = arith.constant 2 : i32
      %c2_i32_16 = arith.constant 2 : i32
      %c0_i32_17 = arith.constant 0 : i32
      %30 = tpu.memref_slice %arg2[%12, %c0_i32_17] : memref<50x8xf32, #tpu.memory_space<any>> -> memref<1x8xf32, #tpu.memory_space<any>>
      %31 = tpu.memref_squeeze %30 : memref<1x8xf32, #tpu.memory_space<any>> -> memref<8xf32, #tpu.memory_space<any>>
      %c0_i32_18 = arith.constant 0 : i32
      %32 = tpu.memref_slice %arg6[%c2_i32, %c0_i32_18] : memref<8x8xf32, #tpu.memory_space<vmem>> -> memref<1x8xf32, #tpu.memory_space<vmem>>
      %33 = tpu.memref_squeeze %32 : memref<1x8xf32, #tpu.memory_space<vmem>> -> memref<8xf32, #tpu.memory_space<vmem>>
      %34 = tpu.memref_slice %arg8[%c2_i32_16] : memref<8x!tpu.dma_semaphore, #tpu.memory_space<semaphore_mem>> -> memref<1x!tpu.dma_semaphore, #tpu.memory_space<semaphore_mem>>
      %35 = tpu.memref_squeeze %34 : memref<1x!tpu.dma_semaphore, #tpu.memory_space<semaphore_mem>> -> memref<!tpu.dma_semaphore, #tpu.memory_space<semaphore_mem>>
      tpu.enqueue_dma source(%31 : memref<8xf32, #tpu.memory_space<any>>) target(%33 : memref<8xf32, #tpu.memory_space<vmem>>) target_semaphore(%35 : memref<!tpu.dma_semaphore, #tpu.memory_space<semaphore_mem>>)
      %c3_i32 = arith.constant 3 : i32
      %c3_i32_19 = arith.constant 3 : i32
      %c0_i32_20 = arith.constant 0 : i32
      %36 = tpu.memref_slice %arg2[%13, %c0_i32_20] : memref<50x8xf32, #tpu.memory_space<any>> -> memref<1x8xf32, #tpu.memory_space<any>>
      %37 = tpu.memref_squeeze %36 : memref<1x8xf32, #tpu.memory_space<any>> -> memref<8xf32, #tpu.memory_space<any>>
      %c0_i32_21 = arith.constant 0 : i32
      %38 = tpu.memref_slice %arg6[%c3_i32, %c0_i32_21] : memref<8x8xf32, #tpu.memory_space<vmem>> -> memref<1x8xf32, #tpu.memory_space<vmem>>
      %39 = tpu.memref_squeeze %38 : memref<1x8xf32, #tpu.memory_space<vmem>> -> memref<8xf32, #tpu.memory_space<vmem>>
      %40 = tpu.memref_slice %arg8[%c3_i32_19] : memref<8x!tpu.dma_semaphore, #tpu.memory_space<semaphore_mem>> -> memref<1x!tpu.dma_semaphore, #tpu.memory_space<semaphore_mem>>
      %41 = tpu.memref_squeeze %40 : memref<1x!tpu.dma_semaphore, #tpu.memory_space<semaphore_mem>> -> memref<!tpu.dma_semaphore, #tpu.memory_space<semaphore_mem>>
      tpu.enqueue_dma source(%37 : memref<8xf32, #tpu.memory_space<any>>) target(%39 : memref<8xf32, #tpu.memory_space<vmem>>) target_semaphore(%41 : memref<!tpu.dma_semaphore, #tpu.memory_space<semaphore_mem>>)
      %c4_i32 = arith.constant 4 : i32
      %c4_i32_22 = arith.constant 4 : i32
      %c0_i32_23 = arith.constant 0 : i32
      %42 = tpu.memref_slice %arg2[%14, %c0_i32_23] : memref<50x8xf32, #tpu.memory_space<any>> -> memref<1x8xf32, #tpu.memory_space<any>>
      %43 = tpu.memref_squeeze %42 : memref<1x8xf32, #tpu.memory_space<any>> -> memref<8xf32, #tpu.memory_space<any>>
      %c0_i32_24 = arith.constant 0 : i32
      %44 = tpu.memref_slice %arg6[%c4_i32, %c0_i32_24] : memref<8x8xf32, #tpu.memory_space<vmem>> -> memref<1x8xf32, #tpu.memory_space<vmem>>
      %45 = tpu.memref_squeeze %44 : memref<1x8xf32, #tpu.memory_space<vmem>> -> memref<8xf32, #tpu.memory_space<vmem>>
      %46 = tpu.memref_slice %arg8[%c4_i32_22] : memref<8x!tpu.dma_semaphore, #tpu.memory_space<semaphore_mem>> -> memref<1x!tpu.dma_semaphore, #tpu.memory_space<semaphore_mem>>
      %47 = tpu.memref_squeeze %46 : memref<1x!tpu.dma_semaphore, #tpu.memory_space<semaphore_mem>> -> memref<!tpu.dma_semaphore, #tpu.memory_space<semaphore_mem>>
      tpu.enqueue_dma source(%43 : memref<8xf32, #tpu.memory_space<any>>) target(%45 : memref<8xf32, #tpu.memory_space<vmem>>) target_semaphore(%47 : memref<!tpu.dma_semaphore, #tpu.memory_space<semaphore_mem>>)
      %c5_i32 = arith.constant 5 : i32
      %c5_i32_25 = arith.constant 5 : i32
      %c0_i32_26 = arith.constant 0 : i32
      %48 = tpu.memref_slice %arg2[%15, %c0_i32_26] : memref<50x8xf32, #tpu.memory_space<any>> -> memref<1x8xf32, #tpu.memory_space<any>>
      %49 = tpu.memref_squeeze %48 : memref<1x8xf32, #tpu.memory_space<any>> -> memref<8xf32, #tpu.memory_space<any>>
      %c0_i32_27 = arith.constant 0 : i32
      %50 = tpu.memref_slice %arg6[%c5_i32, %c0_i32_27] : memref<8x8xf32, #tpu.memory_space<vmem>> -> memref<1x8xf32, #tpu.memory_space<vmem>>
      %51 = tpu.memref_squeeze %50 : memref<1x8xf32, #tpu.memory_space<vmem>> -> memref<8xf32, #tpu.memory_space<vmem>>
      %52 = tpu.memref_slice %arg8[%c5_i32_25] : memref<8x!tpu.dma_semaphore, #tpu.memory_space<semaphore_mem>> -> memref<1x!tpu.dma_semaphore, #tpu.memory_space<semaphore_mem>>
      %53 = tpu.memref_squeeze %52 : memref<1x!tpu.dma_semaphore, #tpu.memory_space<semaphore_mem>> -> memref<!tpu.dma_semaphore, #tpu.memory_space<semaphore_mem>>
      tpu.enqueue_dma source(%49 : memref<8xf32, #tpu.memory_space<any>>) target(%51 : memref<8xf32, #tpu.memory_space<vmem>>) target_semaphore(%53 : memref<!tpu.dma_semaphore, #tpu.memory_space<semaphore_mem>>)
      %c6_i32 = arith.constant 6 : i32
      %c6_i32_28 = arith.constant 6 : i32
      %c0_i32_29 = arith.constant 0 : i32
      %54 = tpu.memref_slice %arg2[%16, %c0_i32_29] : memref<50x8xf32, #tpu.memory_space<any>> -> memref<1x8xf32, #tpu.memory_space<any>>
      %55 = tpu.memref_squeeze %54 : memref<1x8xf32, #tpu.memory_space<any>> -> memref<8xf32, #tpu.memory_space<any>>
      %c0_i32_30 = arith.constant 0 : i32
      %56 = tpu.memref_slice %arg6[%c6_i32, %c0_i32_30] : memref<8x8xf32, #tpu.memory_space<vmem>> -> memref<1x8xf32, #tpu.memory_space<vmem>>
      %57 = tpu.memref_squeeze %56 : memref<1x8xf32, #tpu.memory_space<vmem>> -> memref<8xf32, #tpu.memory_space<vmem>>
      %58 = tpu.memref_slice %arg8[%c6_i32_28] : memref<8x!tpu.dma_semaphore, #tpu.memory_space<semaphore_mem>> -> memref<1x!tpu.dma_semaphore, #tpu.memory_space<semaphore_mem>>
      %59 = tpu.memref_squeeze %58 : memref<1x!tpu.dma_semaphore, #tpu.memory_space<semaphore_mem>> -> memref<!tpu.dma_semaphore, #tpu.memory_space<semaphore_mem>>
      tpu.enqueue_dma source(%55 : memref<8xf32, #tpu.memory_space<any>>) target(%57 : memref<8xf32, #tpu.memory_space<vmem>>) target_semaphore(%59 : memref<!tpu.dma_semaphore, #tpu.memory_space<semaphore_mem>>)
      %c7_i32 = arith.constant 7 : i32
      %c7_i32_31 = arith.constant 7 : i32
      %c0_i32_32 = arith.constant 0 : i32
      %60 = tpu.memref_slice %arg2[%17, %c0_i32_32] : memref<50x8xf32, #tpu.memory_space<any>> -> memref<1x8xf32, #tpu.memory_space<any>>
      %61 = tpu.memref_squeeze %60 : memref<1x8xf32, #tpu.memory_space<any>> -> memref<8xf32, #tpu.memory_space<any>>
      %c0_i32_33 = arith.constant 0 : i32
      %62 = tpu.memref_slice %arg6[%c7_i32, %c0_i32_33] : memref<8x8xf32, #tpu.memory_space<vmem>> -> memref<1x8xf32, #tpu.memory_space<vmem>>
      %63 = tpu.memref_squeeze %62 : memref<1x8xf32, #tpu.memory_space<vmem>> -> memref<8xf32, #tpu.memory_space<vmem>>
      %64 = tpu.memref_slice %arg8[%c7_i32_31] : memref<8x!tpu.dma_semaphore, #tpu.memory_space<semaphore_mem>> -> memref<1x!tpu.dma_semaphore, #tpu.memory_space<semaphore_mem>>
      %65 = tpu.memref_squeeze %64 : memref<1x!tpu.dma_semaphore, #tpu.memory_space<semaphore_mem>> -> memref<!tpu.dma_semaphore, #tpu.memory_space<semaphore_mem>>
      tpu.enqueue_dma source(%61 : memref<8xf32, #tpu.memory_space<any>>) target(%63 : memref<8xf32, #tpu.memory_space<vmem>>) target_semaphore(%65 : memref<!tpu.dma_semaphore, #tpu.memory_space<semaphore_mem>>)
      %c0_i32_34 = arith.constant 0 : i32
      %c0_i32_35 = arith.constant 0 : i32
      %c0_i32_36 = arith.constant 0 : i32
      %66 = tpu.memref_slice %arg2[%10, %c0_i32_36] : memref<50x8xf32, #tpu.memory_space<any>> -> memref<1x8xf32, #tpu.memory_space<any>>
      %67 = tpu.memref_squeeze %66 : memref<1x8xf32, #tpu.memory_space<any>> -> memref<8xf32, #tpu.memory_space<any>>
      %c0_i32_37 = arith.constant 0 : i32
      %68 = tpu.memref_slice %arg6[%c0_i32_34, %c0_i32_37] : memref<8x8xf32, #tpu.memory_space<vmem>> -> memref<1x8xf32, #tpu.memory_space<vmem>>
      %69 = tpu.memref_squeeze %68 : memref<1x8xf32, #tpu.memory_space<vmem>> -> memref<8xf32, #tpu.memory_space<vmem>>
      %70 = tpu.memref_slice %arg8[%c0_i32_35] : memref<8x!tpu.dma_semaphore, #tpu.memory_space<semaphore_mem>> -> memref<1x!tpu.dma_semaphore, #tpu.memory_space<semaphore_mem>>
      %71 = tpu.memref_squeeze %70 : memref<1x!tpu.dma_semaphore, #tpu.memory_space<semaphore_mem>> -> memref<!tpu.dma_semaphore, #tpu.memory_space<semaphore_mem>>
      tpu.wait_dma2 semaphore(%71 : memref<!tpu.dma_semaphore, #tpu.memory_space<semaphore_mem>>) src(%67 : memref<8xf32, #tpu.memory_space<any>>) dst(%69 : memref<8xf32, #tpu.memory_space<vmem>>)
      %c1_i32_38 = arith.constant 1 : i32
      %c1_i32_39 = arith.constant 1 : i32
      %c0_i32_40 = arith.constant 0 : i32
      %72 = tpu.memref_slice %arg2[%11, %c0_i32_40] : memref<50x8xf32, #tpu.memory_space<any>> -> memref<1x8xf32, #tpu.memory_space<any>>
      %73 = tpu.memref_squeeze %72 : memref<1x8xf32, #tpu.memory_space<any>> -> memref<8xf32, #tpu.memory_space<any>>
      %c0_i32_41 = arith.constant 0 : i32
      %74 = tpu.memref_slice %arg6[%c1_i32_38, %c0_i32_41] : memref<8x8xf32, #tpu.memory_space<vmem>> -> memref<1x8xf32, #tpu.memory_space<vmem>>
      %75 = tpu.memref_squeeze %74 : memref<1x8xf32, #tpu.memory_space<vmem>> -> memref<8xf32, #tpu.memory_space<vmem>>
      %76 = tpu.memref_slice %arg8[%c1_i32_39] : memref<8x!tpu.dma_semaphore, #tpu.memory_space<semaphore_mem>> -> memref<1x!tpu.dma_semaphore, #tpu.memory_space<semaphore_mem>>
      %77 = tpu.memref_squeeze %76 : memref<1x!tpu.dma_semaphore, #tpu.memory_space<semaphore_mem>> -> memref<!tpu.dma_semaphore, #tpu.memory_space<semaphore_mem>>
      tpu.wait_dma2 semaphore(%77 : memref<!tpu.dma_semaphore, #tpu.memory_space<semaphore_mem>>) src(%73 : memref<8xf32, #tpu.memory_space<any>>) dst(%75 : memref<8xf32, #tpu.memory_space<vmem>>)
      %c2_i32_42 = arith.constant 2 : i32
      %c2_i32_43 = arith.constant 2 : i32
      %c0_i32_44 = arith.constant 0 : i32
      %78 = tpu.memref_slice %arg2[%12, %c0_i32_44] : memref<50x8xf32, #tpu.memory_space<any>> -> memref<1x8xf32, #tpu.memory_space<any>>
      %79 = tpu.memref_squeeze %78 : memref<1x8xf32, #tpu.memory_space<any>> -> memref<8xf32, #tpu.memory_space<any>>
      %c0_i32_45 = arith.constant 0 : i32
      %80 = tpu.memref_slice %arg6[%c2_i32_42, %c0_i32_45] : memref<8x8xf32, #tpu.memory_space<vmem>> -> memref<1x8xf32, #tpu.memory_space<vmem>>
      %81 = tpu.memref_squeeze %80 : memref<1x8xf32, #tpu.memory_space<vmem>> -> memref<8xf32, #tpu.memory_space<vmem>>
      %82 = tpu.memref_slice %arg8[%c2_i32_43] : memref<8x!tpu.dma_semaphore, #tpu.memory_space<semaphore_mem>> -> memref<1x!tpu.dma_semaphore, #tpu.memory_space<semaphore_mem>>
      %83 = tpu.memref_squeeze %82 : memref<1x!tpu.dma_semaphore, #tpu.memory_space<semaphore_mem>> -> memref<!tpu.dma_semaphore, #tpu.memory_space<semaphore_mem>>
      tpu.wait_dma2 semaphore(%83 : memref<!tpu.dma_semaphore, #tpu.memory_space<semaphore_mem>>) src(%79 : memref<8xf32, #tpu.memory_space<any>>) dst(%81 : memref<8xf32, #tpu.memory_space<vmem>>)
      %c3_i32_46 = arith.constant 3 : i32
      %c3_i32_47 = arith.constant 3 : i32
      %c0_i32_48 = arith.constant 0 : i32
      %84 = tpu.memref_slice %arg2[%13, %c0_i32_48] : memref<50x8xf32, #tpu.memory_space<any>> -> memref<1x8xf32, #tpu.memory_space<any>>
      %85 = tpu.memref_squeeze %84 : memref<1x8xf32, #tpu.memory_space<any>> -> memref<8xf32, #tpu.memory_space<any>>
      %c0_i32_49 = arith.constant 0 : i32
      %86 = tpu.memref_slice %arg6[%c3_i32_46, %c0_i32_49] : memref<8x8xf32, #tpu.memory_space<vmem>> -> memref<1x8xf32, #tpu.memory_space<vmem>>
      %87 = tpu.memref_squeeze %86 : memref<1x8xf32, #tpu.memory_space<vmem>> -> memref<8xf32, #tpu.memory_space<vmem>>
      %88 = tpu.memref_slice %arg8[%c3_i32_47] : memref<8x!tpu.dma_semaphore, #tpu.memory_space<semaphore_mem>> -> memref<1x!tpu.dma_semaphore, #tpu.memory_space<semaphore_mem>>
      %89 = tpu.memref_squeeze %88 : memref<1x!tpu.dma_semaphore, #tpu.memory_space<semaphore_mem>> -> memref<!tpu.dma_semaphore, #tpu.memory_space<semaphore_mem>>
      tpu.wait_dma2 semaphore(%89 : memref<!tpu.dma_semaphore, #tpu.memory_space<semaphore_mem>>) src(%85 : memref<8xf32, #tpu.memory_space<any>>) dst(%87 : memref<8xf32, #tpu.memory_space<vmem>>)
      %c4_i32_50 = arith.constant 4 : i32
      %c4_i32_51 = arith.constant 4 : i32
      %c0_i32_52 = arith.constant 0 : i32
      %90 = tpu.memref_slice %arg2[%14, %c0_i32_52] : memref<50x8xf32, #tpu.memory_space<any>> -> memref<1x8xf32, #tpu.memory_space<any>>
      %91 = tpu.memref_squeeze %90 : memref<1x8xf32, #tpu.memory_space<any>> -> memref<8xf32, #tpu.memory_space<any>>
      %c0_i32_53 = arith.constant 0 : i32
      %92 = tpu.memref_slice %arg6[%c4_i32_50, %c0_i32_53] : memref<8x8xf32, #tpu.memory_space<vmem>> -> memref<1x8xf32, #tpu.memory_space<vmem>>
      %93 = tpu.memref_squeeze %92 : memref<1x8xf32, #tpu.memory_space<vmem>> -> memref<8xf32, #tpu.memory_space<vmem>>
      %94 = tpu.memref_slice %arg8[%c4_i32_51] : memref<8x!tpu.dma_semaphore, #tpu.memory_space<semaphore_mem>> -> memref<1x!tpu.dma_semaphore, #tpu.memory_space<semaphore_mem>>
      %95 = tpu.memref_squeeze %94 : memref<1x!tpu.dma_semaphore, #tpu.memory_space<semaphore_mem>> -> memref<!tpu.dma_semaphore, #tpu.memory_space<semaphore_mem>>
      tpu.wait_dma2 semaphore(%95 : memref<!tpu.dma_semaphore, #tpu.memory_space<semaphore_mem>>) src(%91 : memref<8xf32, #tpu.memory_space<any>>) dst(%93 : memref<8xf32, #tpu.memory_space<vmem>>)
      %c5_i32_54 = arith.constant 5 : i32
      %c5_i32_55 = arith.constant 5 : i32
      %c0_i32_56 = arith.constant 0 : i32
      %96 = tpu.memref_slice %arg2[%15, %c0_i32_56] : memref<50x8xf32, #tpu.memory_space<any>> -> memref<1x8xf32, #tpu.memory_space<any>>
      %97 = tpu.memref_squeeze %96 : memref<1x8xf32, #tpu.memory_space<any>> -> memref<8xf32, #tpu.memory_space<any>>
      %c0_i32_57 = arith.constant 0 : i32
      %98 = tpu.memref_slice %arg6[%c5_i32_54, %c0_i32_57] : memref<8x8xf32, #tpu.memory_space<vmem>> -> memref<1x8xf32, #tpu.memory_space<vmem>>
      %99 = tpu.memref_squeeze %98 : memref<1x8xf32, #tpu.memory_space<vmem>> -> memref<8xf32, #tpu.memory_space<vmem>>
      %100 = tpu.memref_slice %arg8[%c5_i32_55] : memref<8x!tpu.dma_semaphore, #tpu.memory_space<semaphore_mem>> -> memref<1x!tpu.dma_semaphore, #tpu.memory_space<semaphore_mem>>
      %101 = tpu.memref_squeeze %100 : memref<1x!tpu.dma_semaphore, #tpu.memory_space<semaphore_mem>> -> memref<!tpu.dma_semaphore, #tpu.memory_space<semaphore_mem>>
      tpu.wait_dma2 semaphore(%101 : memref<!tpu.dma_semaphore, #tpu.memory_space<semaphore_mem>>) src(%97 : memref<8xf32, #tpu.memory_space<any>>) dst(%99 : memref<8xf32, #tpu.memory_space<vmem>>)
      %c6_i32_58 = arith.constant 6 : i32
      %c6_i32_59 = arith.constant 6 : i32
      %c0_i32_60 = arith.constant 0 : i32
      %102 = tpu.memref_slice %arg2[%16, %c0_i32_60] : memref<50x8xf32, #tpu.memory_space<any>> -> memref<1x8xf32, #tpu.memory_space<any>>
      %103 = tpu.memref_squeeze %102 : memref<1x8xf32, #tpu.memory_space<any>> -> memref<8xf32, #tpu.memory_space<any>>
      %c0_i32_61 = arith.constant 0 : i32
      %104 = tpu.memref_slice %arg6[%c6_i32_58, %c0_i32_61] : memref<8x8xf32, #tpu.memory_space<vmem>> -> memref<1x8xf32, #tpu.memory_space<vmem>>
      %105 = tpu.memref_squeeze %104 : memref<1x8xf32, #tpu.memory_space<vmem>> -> memref<8xf32, #tpu.memory_space<vmem>>
      %106 = tpu.memref_slice %arg8[%c6_i32_59] : memref<8x!tpu.dma_semaphore, #tpu.memory_space<semaphore_mem>> -> memref<1x!tpu.dma_semaphore, #tpu.memory_space<semaphore_mem>>
      %107 = tpu.memref_squeeze %106 : memref<1x!tpu.dma_semaphore, #tpu.memory_space<semaphore_mem>> -> memref<!tpu.dma_semaphore, #tpu.memory_space<semaphore_mem>>
      tpu.wait_dma2 semaphore(%107 : memref<!tpu.dma_semaphore, #tpu.memory_space<semaphore_mem>>) src(%103 : memref<8xf32, #tpu.memory_space<any>>) dst(%105 : memref<8xf32, #tpu.memory_space<vmem>>)
      %c7_i32_62 = arith.constant 7 : i32
      %c7_i32_63 = arith.constant 7 : i32
      %c0_i32_64 = arith.constant 0 : i32
      %108 = tpu.memref_slice %arg2[%17, %c0_i32_64] : memref<50x8xf32, #tpu.memory_space<any>> -> memref<1x8xf32, #tpu.memory_space<any>>
      %109 = tpu.memref_squeeze %108 : memref<1x8xf32, #tpu.memory_space<any>> -> memref<8xf32, #tpu.memory_space<any>>
      %c0_i32_65 = arith.constant 0 : i32
      %110 = tpu.memref_slice %arg6[%c7_i32_62, %c0_i32_65] : memref<8x8xf32, #tpu.memory_space<vmem>> -> memref<1x8xf32, #tpu.memory_space<vmem>>
      %111 = tpu.memref_squeeze %110 : memref<1x8xf32, #tpu.memory_space<vmem>> -> memref<8xf32, #tpu.memory_space<vmem>>
      %112 = tpu.memref_slice %arg8[%c7_i32_63] : memref<8x!tpu.dma_semaphore, #tpu.memory_space<semaphore_mem>> -> memref<1x!tpu.dma_semaphore, #tpu.memory_space<semaphore_mem>>
      %113 = tpu.memref_squeeze %112 : memref<1x!tpu.dma_semaphore, #tpu.memory_space<semaphore_mem>> -> memref<!tpu.dma_semaphore, #tpu.memory_space<semaphore_mem>>
      tpu.wait_dma2 semaphore(%113 : memref<!tpu.dma_semaphore, #tpu.memory_space<semaphore_mem>>) src(%109 : memref<8xf32, #tpu.memory_space<any>>) dst(%111 : memref<8xf32, #tpu.memory_space<vmem>>)
      %c0_66 = arith.constant 0 : index
      %c0_67 = arith.constant 0 : index
      %114 = vector.load %arg6[%c0_66, %c0_67] : memref<8x8xf32, #tpu.memory_space<vmem>>, vector<8x8xf32>
      %cst_68 = arith.constant dense<0.000000e+00> : vector<8xf32>
      %115 = vector.multi_reduction <add>, %114, %cst_68 [0] : vector<8x8xf32> to vector<8xf32>
      %116 = vector.shape_cast %115 : vector<8xf32> to vector<1x8xf32>
      %c0_69 = arith.constant 0 : index
      %c0_70 = arith.constant 0 : index
      %117 = vector.load %arg7[%c0_69, %c0_70] : memref<1x8xf32, #tpu.memory_space<vmem>>, vector<1x8xf32>
      tpu.vector_store %arg7[%c0_69, %c0_70], %116 {strides = array<i32>} : memref<1x8xf32, #tpu.memory_space<vmem>>, vector<1x8xf32>,
    } else {
    }
    %c0 = arith.constant 0 : index
    %c0_1 = arith.constant 0 : index
    %3 = vector.load %arg7[%c0, %c0_1] : memref<1x8xf32, #tpu.memory_space<vmem>>, vector<1x8xf32>
    %4 = arith.truncf %3 : vector<1x8xf32> to vector<1x8xbf16>
    %c0_2 = arith.constant 0 : index
    %c0_3 = arith.constant 0 : index
    %5 = vector.load %arg3[%c0_2, %c0_3] : memref<8x128xbf16, #tpu.memory_space<vmem>>, vector<8x128xbf16>
    %cst = arith.constant dense<0.000000e+00> : vector<1x128xf32>
    %6 = tpu.matmul %4, %5, %cst {dimension_numbers = #tpu.dot_dimension_numbers<[1], [0], [0], [1], [0, 0, 1, 1], [], []>} : vector<1x8xbf16>, vector<8x128xbf16>, vector<1x128xf32> -> vector<1x128xf32>
    %c0_4 = arith.constant 0 : index
    %c0_5 = arith.constant 0 : index
    %7 = vector.load %arg4[%c0_4, %c0_5] : memref<1x128xf32, #tpu.memory_space<vmem>>, vector<1x128xf32>
    %8 = arith.addf %6, %7 : vector<1x128xf32>
    %c0_6 = arith.constant 0 : index
    %c0_7 = arith.constant 0 : index
    %9 = vector.load %arg5[%c0_6, %c0_7] : memref<1x128xf32, #tpu.memory_space<vmem>>, vector<1x128xf32>
    tpu.vector_store %arg5[%c0_6, %c0_7], %8 {strides = array<i32>} : memref<1x128xf32, #tpu.memory_space<vmem>>, vector<1x128xf32>,
    return
  }
  func.func @transform_1(%arg0: i32, %arg1: memref<8xi32, #tpu.memory_space<smem>>) -> (i32, i32) {
    %c0_i32 = arith.constant 0 : i32
    %c0_i32_0 = arith.constant 0 : i32
    return %c0_i32, %arg0 : i32, i32
  }
  func.func @transform_2(%arg0: i32, %arg1: memref<8xi32, #tpu.memory_space<smem>>) -> (i32, i32) {
    %c0_i32 = arith.constant 0 : i32
    %c0_i32_0 = arith.constant 0 : i32
    return %c0_i32, %arg0 : i32, i32
  }
  func.func @transform_3(%arg0: i32, %arg1: memref<8xi32, #tpu.memory_space<smem>>) -> (i32, i32) {
    %c0_i32 = arith.constant 0 : i32
    %c0_i32_0 = arith.constant 0 : i32
    return %c0_i32, %arg0 : i32, i32
  }
}

</mosaic_0001>

<bundles_post_ra>
// kernel: word2vec_forward.1
= control target key start
LH: loop header
LB: loop body
LE: loop exit
PB: predicated region body
PF: predicated region fallthrough
CT: control target
= control target key end

     0   :  { %s782_s0 = inlined_call_operand.vmem [shape: s32[8], index: 0, kind: input, shape index: {}]   ;;  %s783_s1 = inlined_call_operand.vmem [shape: f32[50,8], index: 1, kind: input, shape index: {}]   ;;  %s784_s2 = inlined_call_operand.vmem [shape: bf16[8,128], index: 2, kind: input, shape index: {}]   ;;  %s785_s3 = inlined_call_operand.vmem [shape: f32[1,128], index: 3, kind: input, shape index: {}]   ;;  %s786_s4 = inlined_call_operand.vmem [shape: f32[1,128], index: 4, kind: output, shape index: {}]  }
   0x1   :  { %s9_s17 = sshll.u32 %s782_s0, 4  ;;  %s10_s17 = int_to_ptr.vmem [resolvable:$true] %s9_s17 }
   0x2   :  { %s683_s18 = scalar_lea.vmem %s10_s17, 16  ;;  %p688_p1 = scmp.lt.s32.totalorder %s10_s17, %s10_s17 }
   0x3   :  { %p684_p0 = scmp.ne.s32.totalorder %s10_s17, %s683_s18  ;;  %p689_p2 = scmp.lt.s32.totalorder %s683_s18, %s683_s18 }
   0x5   :  { %p690_p3 = por %p689_p2, %p688_p1 }
   0x7   :  { %p691_p4 = pnand %p690_p3, %p684_p0 }
   0x9   :  { %694 = shalt.err (!%p691_p4)  }
   0xa   :  { %s713_s19 = smov [#allocation6]  }
   0xb   :  { %12 = dma.vmem_to_smem %s10_s17, 16, %s713_s19, [#allocation5] }
   0xc   :  { %695 = dma.done.wait [#allocation5], 16 }
   0xd   :  { %696 = vsyncadd [#allocation5], 4294967280 }
   0xe   :  { %14 = sfence }
   0xf   :  { %s24_s20 = sld [smem:[#allocation6]] }
  0x10   :  { %s656_s21 = sld [smem:[#allocation6 + $0x1]] }
  0x11   :  { %s657_s22 = sld [smem:[#allocation6 + $0x2]] }
  0x12   :  { %s658_s23 = sld [smem:[#allocation6 + $0x3]] }
  0x13   :  { %s659_s24 = sld [smem:[#allocation6 + $0x4]] }
  0x14   :  { %s660_s25 = sld [smem:[#allocation6 + $0x5]] }
  0x15   :  { %s661_s0 = sld [smem:[#allocation6 + $0x6]]  ;;  %s32_s28 = scalar_lea.vmem %s783_s1, %s24_s20 }
  0x16   :  { %s747_s29 = sld [smem:[#allocation6 + $0x7]]  ;;  %v51_v0 = vld [vmem:[%s32_s28] sm:$0x1] }
  0x17   :  { %52 = vst [vmem:[#allocation2] sm:$0x1] %v51_v0 }
  0x18   :  { %78 = vsyncadd [#allocation4], 16  ;;  %s79_s6 = scalar_lea.vmem %s783_s1, %s656_s21 }
  0x19   :  { %v100_v1 = vld [vmem:[%s79_s6] sm:$0x1] }
  0x1a   :  { %101 = vst [vmem:[#allocation2 + $0x1] sm:$0x1] %v100_v1 }
  0x1b   :  { %127 = vsyncadd [#allocation4 + $0x1], 16  ;;  %s128_s9 = scalar_lea.vmem %s783_s1, %s657_s22 }
  0x1c   :  { %v149_v2 = vld [vmem:[%s128_s9] sm:$0x1] }
  0x1d   :  { %150 = vst [vmem:[#allocation2 + $0x2] sm:$0x1] %v149_v2 }
  0x1e   :  { %176 = vsyncadd [#allocation4 + $0x2], 16  ;;  %s177_s12 = scalar_lea.vmem %s783_s1, %s658_s23 }
  0x1f   :  { %v198_v3 = vld [vmem:[%s177_s12] sm:$0x1] }
  0x20   :  { %199 = vst [vmem:[#allocation2 + $0x3] sm:$0x1] %v198_v3 }
  0x21   :  { %225 = vsyncadd [#allocation4 + $0x3], 16  ;;  %s226_s15 = scalar_lea.vmem %s783_s1, %s659_s24 }
  0x22   :  { %v247_v4 = vld [vmem:[%s226_s15] sm:$0x1] }
  0x23   :  { %248 = vst [vmem:[#allocation2 + $0x4] sm:$0x1] %v247_v4 }
  0x24   :  { %274 = vsyncadd [#allocation4 + $0x4], 16  ;;  %s275_s18 = scalar_lea.vmem %s783_s1, %s660_s25 }
  0x25   :  { %v296_v5 = vld [vmem:[%s275_s18] sm:$0x1] }
  0x26   :  { %297 = vst [vmem:[#allocation2 + $0x5] sm:$0x1] %v296_v5 }
  0x27   :  { %323 = vsyncadd [#allocation4 + $0x5], 16  ;;  %s324_s21 = scalar_lea.vmem %s783_s1, %s661_s0 }
  0x28   :  { %v345_v6 = vld [vmem:[%s324_s21] sm:$0x1] }
  0x29   :  { %346 = vst [vmem:[#allocation2 + $0x6] sm:$0x1] %v345_v6 }
  0x2a   :  { %372 = vsyncadd [#allocation4 + $0x6], 16  ;;  %s373_s24 = scalar_lea.vmem %s783_s1, %s747_s29 }
  0x2b   :  { %v394_v7 = vld [vmem:[%s373_s24] sm:$0x1] }
  0x2c   :  { %395 = vst [vmem:[#allocation2 + $0x7] sm:$0x1] %v394_v7 }
  0x2d   :  { %421 = vsyncadd [#allocation4 + $0x7], 16 }
  0x2e   :  { %697 = dma.done.wait [#allocation4], 16 }
  0x2f   :  { %698 = vsyncadd [#allocation4], 4294967280 }
  0x30   :  { %699 = dma.done.wait [#allocation4 + $0x1], 16 }
  0x31   :  { %700 = vsyncadd [#allocation4 + $0x1], 4294967280 }
  0x32   :  { %701 = dma.done.wait [#allocation4 + $0x2], 16 }
  0x33   :  { %702 = vsyncadd [#allocation4 + $0x2], 4294967280 }
  0x34   :  { %703 = dma.done.wait [#allocation4 + $0x3], 16 }
  0x35   :  { %704 = vsyncadd [#allocation4 + $0x3], 4294967280 }
  0x36   :  { %705 = dma.done.wait [#allocation4 + $0x4], 16 }
  0x37   :  { %706 = vsyncadd [#allocation4 + $0x4], 4294967280 }
  0x38   :  { %707 = dma.done.wait [#allocation4 + $0x5], 16 }
  0x39   :  { %708 = vsyncadd [#allocation4 + $0x5], 4294967280 }
  0x3a   :  { %709 = dma.done.wait [#allocation4 + $0x6], 16 }
  0x3b   :  { %710 = vsyncadd [#allocation4 + $0x6], 4294967280 }
  0x3c   :  { %711 = dma.done.wait [#allocation4 + $0x7], 16 }
  0x3d   :  { %712 = vsyncadd [#allocation4 + $0x7], 4294967280  ;;  %v714_v8 = vmov 0.0   ;;  %vm715_vm0 = vmmov 0   ;;  %vm457_vm1 = vcmask 1043456   ;;  %vm439_vm2 = vcmask 64512  }
  0x3e   :  { %674 = vmatprep.subr.bf16.mxu0 %v714_v8  ;;  %676 = vmatprep.mubr.msk.bf16.mxu0 %vm715_vm0, %v714_v8  ;;  %v451_v9 = vld [vmem:[%s784_s2] sm:$0xf]  ;;  %vm447_vm3 = vcmask 57344  }
  0x3f   :  { %v438_v10 = vld [vmem:[#allocation2] sm:$0xff]  ;;  %v459_v11 = vsel %vm457_vm1, %v451_v9, 0 }
  0x40   :  { %v440_v12 = vsel %vm439_vm2, %v438_v10, 0.0  ;;  %675 = vmatpush3.bf16.msra.mxu0 %v459_v11  ;;  %v452_v21 = vld [vmem:[%s785_s3] sm:$0x1] }
  0x41   :  { %v441_v13 = vrot.slane %v440_v12, 4 }
  0x43   :  { %v442_v14 = vadd.f32 %v441_v13, %v440_v12 }
  0x45   :  { %v443_v15 = vrot.slane %v442_v14, 2 }
  0x47   :  { %v444_v16 = vadd.f32 %v443_v15, %v442_v14 }
  0x49   :  { %v445_v17 = vrot.slane %v444_v16, 1 }
  0x4b   :  { %v446_v18 = vadd.f32 %v445_v17, %v444_v16 }
  0x4d   :  { %448 = vst.msk [vmem:[#allocation3] sm:$0x1] %vm447_vm3, %v446_v18 }
  0x54   :  { %v449_v19 = vld [vmem:[#allocation3] sm:$0x1] }
  0x55   :  { %v450_v20 = vpack.c.bf16 %v449_v19, %v449_v19 }
  0x57   :  { %677 = vmatmul.mubr.msk.bf16.vlgmr.msra.gmra.mxu0 %vm439_vm2, %v450_v20 }
 0x117   :  { %v495_v22 = vpop.f32.mrf.mxu0 }
 0x118   :  { %v496_v23 = vadd.f32 %v495_v22, %v452_v21 }
 0x119   :  { %v678_v24 = vpop.f32.mrf.mxu0 }
 0x11a   :  { %501 = vst [vmem:[%s786_s4] sm:$0x1] %v496_v23 }
 0x11b   :  { %v498_v25 = vpop.f32.mrf.mxu0 }
 0x11d   :  { %v679_v26 = vpop.f32.mrf.mxu0 }
 0x11e   :  { %506 = vsyncmov [#allocation4] }
 0x121   :  { %s507_s28 = vpop.sfrf %506 }
 0x122   :  { %p664_p5 = scmp.ne.s32.totalorder %s507_s28, 0 }
 0x124   :  { %511 = shalt.err (%p664_p5)  }
 0x125   :  { %513 = vsyncmov [#allocation4 + $0x1] }
 0x128   :  { %s514_s29 = vpop.sfrf %513 }
 0x129   :  { %p665_p6 = scmp.ne.s32.totalorder %s514_s29, 0 }
 0x12b   :  { %518 = shalt.err (%p665_p6)  }
 0x12c   :  { %520 = vsyncmov [#allocation4 + $0x2] }
 0x12f   :  { %s521_s30 = vpop.sfrf %520 }
 0x130   :  { %p666_p7 = scmp.ne.s32.totalorder %s521_s30, 0 }
 0x132   :  { %525 = shalt.err (%p666_p7)  }
 0x133   :  { %527 = vsyncmov [#allocation4 + $0x3] }
 0x136   :  { %s528_s3 = vpop.sfrf %527 }
 0x137   :  { %p667_p8 = scmp.ne.s32.totalorder %s528_s3, 0 }
 0x139   :  { %532 = shalt.err (%p667_p8)  }
 0x13a   :  { %534 = vsyncmov [#allocation4 + $0x4] }
 0x13d   :  { %s535_s4 = vpop.sfrf %534 }
 0x13e   :  { %p668_p9 = scmp.ne.s32.totalorder %s535_s4, 0 }
 0x140   :  { %539 = shalt.err (%p668_p9)  }
 0x141   :  { %541 = vsyncmov [#allocation4 + $0x5] }
 0x144   :  { %s542_s5 = vpop.sfrf %541 }
 0x145   :  { %p669_p10 = scmp.ne.s32.totalorder %s542_s5, 0 }
 0x147   :  { %546 = shalt.err (%p669_p10)  }
 0x148   :  { %548 = vsyncmov [#allocation4 + $0x6] }
 0x14b   :  { %s549_s6 = vpop.sfrf %548 }
 0x14c   :  { %p670_p11 = scmp.ne.s32.totalorder %s549_s6, 0 }
 0x14e   :  { %553 = shalt.err (%p670_p11)  }
 0x14f   :  { %555 = vsyncmov [#allocation4 + $0x7] }
 0x152   :  { %s556_s7 = vpop.sfrf %555 }
 0x153   :  { %p671_p12 = scmp.ne.s32.totalorder %s556_s7, 0 }
 0x155   :  { %560 = shalt.err (%p671_p12)  }

</bundles_post_ra>
